<compile_context>
chip_gen: v7x
topology: tpu7x:2x2x1
jax: 0.10.0
libtpu: 0.0.40
codegen_flags: <defaults>
</compile_context>

<pallas_src>
import functools

import jax
import jax.numpy as jnp
from jax.experimental import pallas as pl
from jax.experimental.pallas import tpu as pltpu


def _round_up(x: int, m: int) -> int:
    return (x + m - 1) // m * m


def _vmem_capacity_bytes() -> int:
    try:
        info = pltpu.get_tpu_info()
        cap = getattr(info, "vmem_capacity_bytes", None)
        if cap:
            return int(cap)
    except Exception:
        pass
    return 64 * 1024 * 1024  # conservative default (v7x per-core VMEM)


# ---------------------------------------------------------------------------
# Kernels
# ---------------------------------------------------------------------------
def _linear_resident_kernel(x_ref, w_ref, b_ref, o_ref, *, compute_dtype):
    # x_ref: (tm, K); w_ref: (N_pad, K) whole weight, VMEM-resident (constant block
    # index); b_ref: (1, N_pad); o_ref: (tm, N_pad).
    x = x_ref[...]
    if compute_dtype is not None and x.dtype != compute_dtype:
        x = x.astype(compute_dtype)  # weight was cast once in the wrapper
    acc = jax.lax.dot_general(
        x, w_ref[...],
        dimension_numbers=(((1,), (1,)), ((), ())),   # contract K, no weight.T op
        preferred_element_type=jnp.float32)
    o_ref[...] = (acc + b_ref[...].astype(jnp.float32)).astype(o_ref.dtype)


def _linear_ktiled_kernel(x_ref, w_ref, b_ref, o_ref, acc_ref, *, compute_dtype):
    # grid = (Nj, Mi, Kk); K is the innermost reduction axis.
    k = pl.program_id(2)

    @pl.when(k == 0)
    def _():
        acc_ref[...] = jnp.zeros_like(acc_ref)

    x = x_ref[...]
    if compute_dtype is not None and x.dtype != compute_dtype:
        x = x.astype(compute_dtype)
    acc_ref[...] += jax.lax.dot_general(
        x, w_ref[...],
        dimension_numbers=(((1,), (1,)), ((), ())),
        preferred_element_type=jnp.float32)

    @pl.when(k == pl.num_programs(2) - 1)
    def _():
        o_ref[...] = (acc_ref[...] + b_ref[...].astype(jnp.float32)).astype(o_ref.dtype)


# ---------------------------------------------------------------------------
# Wrapper
# ---------------------------------------------------------------------------
def td_linear_flat(x2d, weight, bias, *, compute_dtype=None,
                   _force_ktiled=False, _tm=None, _tn=None, _tk=None):
    """y = x2d @ weight.T + bias with a tiled Pallas kernel.

    x2d:    (M, K)
    weight: (N, K)   (PyTorch nn.Linear layout, used as-is)
    bias:   (N,)
    returns (M, N), same dtype as x2d.
    """
    M, K = x2d.shape
    N, Kw = weight.shape
    assert K == Kw, (K, Kw)
    out_dtype = x2d.dtype

    # Hoist weight cast out of the kernel: once per call, halves weight HBM/VMEM
    # bytes vs. re-casting the (re-used) weight tile per grid step.
    if compute_dtype is not None:
        weight = weight.astype(compute_dtype)

    # Lane-dense output: pad D_out to a multiple of 128 (zero weight rows / bias
    # entries => padded columns are exact zeros, sliced off after the call).
    N_pad = _round_up(N, 128)
    if N_pad != N:
        weight = jnp.pad(weight, ((0, N_pad - N), (0, 0)))
        bias = jnp.pad(bias, (0, N_pad - N))
    b2d = bias.reshape(1, N_pad)

    x_item = jnp.dtype(x2d.dtype).itemsize
    w_item = jnp.dtype(weight.dtype).itemsize
    out_item = jnp.dtype(out_dtype).itemsize

    vmem_cap = _vmem_capacity_bytes()
    budget = int(vmem_cap * 0.7)  # headroom for regalloc / internal scratch

    # Whole weight + bias resident (x2 in case constant-index blocks still
    # double-buffer); per-row streaming cost for x-in / y-out, double-buffered.
    resident_bytes = 2 * (N_pad * K * w_item + N_pad * 4)
    per_row_bytes = 2 * (K * x_item + N_pad * out_item)

    use_resident = (not _force_ktiled) and (
        resident_bytes + 8 * per_row_bytes <= budget)

    if use_resident:
        # ---------------- Weight-stationary path ----------------
        avail = budget - resident_bytes
        if _tm is not None:
            tm = _tm
        else:
            tm_fit = max(8, avail // per_row_bytes)
            if M <= tm_fit:
                tm = M  # full-extent block; no host-side pad of x along M
            else:
                tm = min(int(tm_fit), 1024)
                # 256-aligned row tiles feed the 2x256x256 MXU (v6e/v7x) fully.
                tm = (tm // 256) * 256 if tm >= 256 else (tm // 8) * 8
                tm = max(tm, 8)
        grid = (pl.cdiv(M, tm),)

        est_vmem = resident_bytes + tm * per_row_bytes + (1 << 20)
        vmem_limit = int(min(vmem_cap, max(32 << 20, 2 * est_vmem)))

        kernel = functools.partial(_linear_resident_kernel,
                                   compute_dtype=compute_dtype)
        out = pl.pallas_call(
            kernel,
            out_shape=jax.ShapeDtypeStruct((M, N_pad), out_dtype),
            grid_spec=pltpu.PrefetchScalarGridSpec(
                num_scalar_prefetch=0,
                grid=grid,
                in_specs=[
                    # x row tile: streamed exactly once over the grid.
                    pl.BlockSpec((tm, K), lambda i: (i, 0)),
                    # whole weight / bias: constant block index => fetched once,
                    # VMEM-resident across all row tiles.
                    pl.BlockSpec((N_pad, K), lambda i: (0, 0)),
                    pl.BlockSpec((1, N_pad), lambda i: (0, 0)),
                ],
                out_specs=pl.BlockSpec((tm, N_pad), lambda i: (i, 0)),
            ),
            compiler_params=pltpu.CompilerParams(
                # M axis is fully parallel (megacore-shardable). On v7x this
                # duplicates the resident weight in both cores' VMEM; the 2x
                # weight term in the budget above already covers that.
                dimension_semantics=("parallel",),
                vmem_limit_bytes=vmem_limit),
            cost_estimate=pl.CostEstimate(
                flops=2 * M * K * N_pad,
                transcendentals=0,
                # every operand touched exactly once under this schedule
                bytes_accessed=(M * K * x_item + N_pad * K * w_item
                                + N_pad * 4 + M * N_pad * out_item)),
        )(x2d, weight, b2d)
    else:
        # ---------------- K-tiled fallback (large K and/or large weight) --------
        tm = _tm if _tm is not None else 512
        tn = _tn if _tn is not None else 512
        tk = _tk if _tk is not None else 512
        tm = min(tm, _round_up(M, 8))
        tn = min(tn, N_pad)
        tk = min(tk, _round_up(K, 128))

        def _need(tm_, tn_, tk_):
            return (2 * tm_ * tk_ * x_item + 2 * tn_ * tk_ * w_item
                    + 2 * tm_ * tn_ * out_item + tm_ * tn_ * 4 + 2 * N_pad * 4)

        if _tm is None or _tn is None or _tk is None:
            while _need(tm, tn, tk) > budget:
                if tk > 128 and tk >= max(tm, tn):
                    tk = max(128, (tk // 2) // 128 * 128)
                elif tn > 128 and tn >= tm:
                    tn = max(128, (tn // 2) // 128 * 128)
                elif tm > 8:
                    tm = max(8, (tm // 2) // 8 * 8)
                else:
                    break

        # The contracted dim must be an exact multiple of tk: a ragged K tile would
        # fold garbage into real outputs. Zero-pad K for both operands (neutral).
        K_pad = _round_up(K, tk)
        if K_pad != K:
            x2d = jnp.pad(x2d, ((0, 0), (0, K_pad - K)))
            weight = jnp.pad(weight, ((0, 0), (0, K_pad - K)))

        grid_n = pl.cdiv(N_pad, tn)
        grid_m = pl.cdiv(M, tm)
        grid_k = K_pad // tk
        # N leads so a megacore "parallel" split shards the weight across cores
        # (halves per-core weight VMEM/DMA on v7x); K is last + "arbitrary".
        grid = (grid_n, grid_m, grid_k)

        est_vmem = _need(tm, tn, tk) + (1 << 20)
        vmem_limit = int(min(vmem_cap, max(32 << 20, 2 * est_vmem)))

        kernel = functools.partial(_linear_ktiled_kernel,
                                   compute_dtype=compute_dtype)
        out = pl.pallas_call(
            kernel,
            out_shape=jax.ShapeDtypeStruct((M, N_pad), out_dtype),
            grid_spec=pltpu.PrefetchScalarGridSpec(
                num_scalar_prefetch=0,
                grid=grid,
                in_specs=[
                    pl.BlockSpec((tm, tk), lambda j, i, k: (i, k)),   # x tile
                    pl.BlockSpec((tn, tk), lambda j, i, k: (j, k)),   # weight tile
                    pl.BlockSpec((1, tn), lambda j, i, k: (0, j)),    # bias tile
                ],
                out_specs=pl.BlockSpec((tm, tn), lambda j, i, k: (i, j)),
                scratch_shapes=[pltpu.VMEM((tm, tn), jnp.float32)],
            ),
            compiler_params=pltpu.CompilerParams(
                dimension_semantics=("parallel", "parallel", "arbitrary"),
                vmem_limit_bytes=vmem_limit),
            cost_estimate=pl.CostEstimate(
                flops=2 * M * K_pad * N_pad,
                transcendentals=0,
                # x re-read per N tile, weight re-read per M tile (real schedule)
                bytes_accessed=(grid_n * M * K_pad * x_item
                                + grid_m * N_pad * K_pad * w_item
                                + N_pad * 4 + M * N_pad * out_item)),
        )(x2d, weight, b2d)

    if N_pad != N:
        out = out[:, :N]
    return out


def time_distributed_linear(x, weight, bias, batch_first=False,
                            compute_dtype=None):
    """TimeDistributed(Linear) forward, matching the PyTorch module exactly."""
    if x.ndim <= 2:
        return td_linear_flat(x.reshape(-1, x.shape[-1]), weight, bias,
                              compute_dtype=compute_dtype).reshape(
            x.shape[:-1] + (weight.shape[0],))
    d_in = x.shape[-1]
    x_reshape = x.reshape(-1, d_in)                      # (prod(leading), D_in)
    y = td_linear_flat(x_reshape, weight, bias,
                       compute_dtype=compute_dtype)      # (prod(leading), D_out)
    d_out = y.shape[-1]
    if batch_first:
        return y.reshape(x.shape[0], -1, d_out)          # (B, ..., D_out)
    else:
        return y.reshape(-1, x.shape[1], d_out)          # (T, B, D_out)


if __name__ == "__main__":
    key = jax.random.PRNGKey(0)
    k_x, k_w, k_b, k_x2, k_w2, k_b2 = jax.random.split(key, 6)

    # ---- Test 1: TimeDistributed(nn.Linear) at the module's shapes ----------
    T, B, D_in, D_out = 8, 2, 32, 64
    # x: (T, B, D_in) — time-major (batch_first=False), matches the PyTorch spec.
    x = jax.random.normal(k_x, (T, B, D_in), dtype=jnp.float32)
    # nn.Linear(D_in, D_out) parameters: weight (D_out, D_in), bias (D_out,)
    weight = jax.random.normal(k_w, (D_out, D_in), dtype=jnp.float32) * 0.05
    bias = jax.random.normal(k_b, (D_out,), dtype=jnp.float32) * 0.05

    y = time_distributed_linear(x, weight, bias, batch_first=False)
    y = jax.block_until_ready(y)
    ref = (x.reshape(-1, D_in) @ weight.T + bias).reshape(-1, B, D_out)
    assert y.shape == (T, B, D_out), y.shape
    assert jnp.allclose(y, ref, atol=1e-5, rtol=1e-5)

    # ---- Test 2: exercise the K-tiled accumulator fallback path -------------
    M2, K2, N2 = 128, 256, 256
    x2 = jax.random.normal(k_x2, (M2, K2), dtype=jnp.float32)
    w2 = jax.random.normal(k_w2, (N2, K2), dtype=jnp.float32) * 0.05
    b2 = jax.random.normal(k_b2, (N2,), dtype=jnp.float32) * 0.05
    y2 = td_linear_flat(x2, w2, b2, _force_ktiled=True, _tm=64, _tn=128, _tk=128)
    y2 = jax.block_until_ready(y2)
    ref2 = jnp.dot(x2, w2.T, precision=jax.lax.Precision.HIGHEST) + b2
    assert y2.shape == (M2, N2), y2.shape
    assert jnp.allclose(y2, ref2, atol=2e-4, rtol=2e-4)

    print("KERNEL_OK")
</pallas_src>

<mosaic_0001>
module attributes {stable_mosaic.version = 11 : i64} {
  func.func @_linear_resident_kernel(%arg0: i32, %arg1: memref<16x32xf32, #tpu.memory_space<vmem>>, %arg2: memref<128x32xf32, #tpu.memory_space<vmem>>, %arg3: memref<1x128xf32, #tpu.memory_space<vmem>>, %arg4: memref<16x128xf32, #tpu.memory_space<vmem>>) attributes {dimension_semantics = [#tpu.dimension_semantics<parallel>], iteration_bounds = array<i64: 1>, scalar_prefetch = 0 : i64, scratch_operands = 0 : i64, tpu.core_type = #tpu.core_type<tc>, window_params = [{transform_indices = @transform_0, window_bounds = array<i64: 16, 32>}, {pipeline_mode = #tpu.pipeline_mode<synchronous>, transform_indices = @transform_1, window_bounds = array<i64: 128, 32>}, {pipeline_mode = #tpu.pipeline_mode<synchronous>, transform_indices = @transform_2, window_bounds = array<i64: 1, 128>}, {transform_indices = @transform_3, window_bounds = array<i64: 16, 128>}]} {
    %c0 = arith.constant 0 : index
    %c0_0 = arith.constant 0 : index
    %0 = vector.load %arg1[%c0, %c0_0] : memref<16x32xf32, #tpu.memory_space<vmem>>, vector<16x32xf32>
    %c0_1 = arith.constant 0 : index
    %c0_2 = arith.constant 0 : index
    %1 = vector.load %arg2[%c0_1, %c0_2] : memref<128x32xf32, #tpu.memory_space<vmem>>, vector<128x32xf32>
    %cst = arith.constant dense<0.000000e+00> : vector<16x128xf32>
    %2 = tpu.matmul %0, %1, %cst {dimension_numbers = #tpu.dot_dimension_numbers<[1], [1], [0], [0], [0, 0, 1, 0], [], []>} : vector<16x32xf32>, vector<128x32xf32>, vector<16x128xf32> -> vector<16x128xf32>
    %c0_3 = arith.constant 0 : index
    %c0_4 = arith.constant 0 : index
    %3 = vector.load %arg3[%c0_3, %c0_4] : memref<1x128xf32, #tpu.memory_space<vmem>>, vector<1x128xf32>
    %4 = vector.broadcast %3 : vector<1x128xf32> to vector<16x128xf32>
    %5 = arith.addf %2, %4 : vector<16x128xf32>
    %c0_5 = arith.constant 0 : index
    %c0_6 = arith.constant 0 : index
    %6 = vector.load %arg4[%c0_5, %c0_6] : memref<16x128xf32, #tpu.memory_space<vmem>>, vector<16x128xf32>
    tpu.vector_store %arg4[%c0_5, %c0_6], %5 {strides = array<i32>} : memref<16x128xf32, #tpu.memory_space<vmem>>, vector<16x128xf32>,
    return
  }
  func.func @transform_0(%arg0: i32) -> (i32, i32) {
    %c0_i32 = arith.constant 0 : i32
    %c0_i32_0 = arith.constant 0 : i32
    return %arg0, %c0_i32 : i32, i32
  }
  func.func @transform_1(%arg0: i32) -> (i32, i32) {
    %c0_i32 = arith.constant 0 : i32
    %c0_i32_0 = arith.constant 0 : i32
    %c0_i32_1 = arith.constant 0 : i32
    return %c0_i32, %c0_i32_0 : i32, i32
  }
  func.func @transform_2(%arg0: i32) -> (i32, i32) {
    %c0_i32 = arith.constant 0 : i32
    %c0_i32_0 = arith.constant 0 : i32
    %c0_i32_1 = arith.constant 0 : i32
    return %c0_i32, %c0_i32_0 : i32, i32
  }
  func.func @transform_3(%arg0: i32) -> (i32, i32) {
    %c0_i32 = arith.constant 0 : i32
    %c0_i32_0 = arith.constant 0 : i32
    return %arg0, %c0_i32 : i32, i32
  }
}

</mosaic_0001>

<bundles_post_ra>
// kernel: tpu_custom_call.1
= control target key start
LH: loop header
LB: loop body
LE: loop exit
PB: predicated region body
PF: predicated region fallthrough
CT: control target
= control target key end

     0   :  { %vm40_vm0 = vcmask 261120   ;;  %s467_s0 = inlined_call_operand.vmem [shape: f32[16,32], index: 0, kind: input, shape index: {}]   ;;  %s468_s1 = inlined_call_operand.vmem [shape: f32[128,32], index: 1, kind: input, shape index: {}]   ;;  %s469_s2 = inlined_call_operand.vmem [shape: f32[1,128], index: 2, kind: input, shape index: {}]   ;;  %s470_s3 = inlined_call_operand.hbm [shape: f32[16,128], index: 3, kind: output, shape index: {}]  }
   0x1   :  { %v17_v0 = vld [vmem:[%s468_s1] sm:$0xff]  ;;  %v18_v1 = vld [vmem:[%s468_s1 + $0x8] sm:$0xff]  ;;  %v19_v2 = vld [vmem:[%s468_s1 + $0x10] sm:$0xff] }
   0x2   :  { %v260_v3 = vpack.c.bf16 %v18_v1, %v17_v0  ;;  %vm369_vm1 = vmpackc.low %vm40_vm0, %vm40_vm0  ;;  %v20_v5 = vld [vmem:[%s468_s1 + $0x18] sm:$0xff]  ;;  %v15_v7 = vld [vmem:[%s467_s0] sm:$0xff] }
   0x3   :  { %v266_v6 = vpack.c.bf16 %v20_v5, %v19_v2  ;;  %v21_v8 = vld [vmem:[%s468_s1 + $0x20] sm:$0xff]  ;;  %v22_v9 = vld [vmem:[%s468_s1 + $0x28] sm:$0xff]  ;;  %257 = vmatprep.mubr.msk.f32.mxu0 %vm40_vm0, %v15_v7 }
   0x4   :  { %262 = vmatprep.subr.msk.bf16.mxu0 %vm369_vm1, %v260_v3 }
   0x5   :  { %265 = vmatpush3.bf16.xpose.msk.msra.mxu0 %vm369_vm1, %v260_v3 }
   0x6   :  { %268 = vmatprep.subr.msk.bf16.mxu0 %vm369_vm1, %v266_v6 }
   0x7   :  { %8 = vsyncpa [#allocation3], 0  ;;  %v272_v10 = vpack.c.bf16 %v22_v9, %v21_v8  ;;  %v23_v11 = vld [vmem:[%s468_s1 + $0x30] sm:$0xff]  ;;  %v24_v12 = vld [vmem:[%s468_s1 + $0x38] sm:$0xff] }
   0x8   :  { %v278_v13 = vpack.c.bf16 %v24_v12, %v23_v11  ;;  %v25_v14 = vld [vmem:[%s468_s1 + $0x40] sm:$0xff]  ;;  %v26_v15 = vld [vmem:[%s468_s1 + $0x48] sm:$0xff]  ;;  %v27_v17 = vld [vmem:[%s468_s1 + $0x50] sm:$0xff] }
   0x9   :  { %v284_v16 = vpack.c.bf16 %v26_v15, %v25_v14  ;;  %v28_v18 = vld [vmem:[%s468_s1 + $0x58] sm:$0xff]  ;;  %v29_v20 = vld [vmem:[%s468_s1 + $0x60] sm:$0xff]  ;;  %v30_v21 = vld [vmem:[%s468_s1 + $0x68] sm:$0xff] }
   0xa   :  { %v290_v19 = vpack.c.bf16 %v28_v18, %v27_v17  ;;  %v296_v22 = vpack.c.bf16 %v30_v21, %v29_v20  ;;  %v31_v23 = vld [vmem:[%s468_s1 + $0x70] sm:$0xff]  ;;  %v32_v24 = vld [vmem:[%s468_s1 + $0x78] sm:$0xff]  ;;  %v16_v26 = vld [vmem:[%s467_s0 + $0x8] sm:$0xff]  ;;  %s335_s1 = smov [#allocation2]  }
   0xb   :  { %v302_v25 = vpack.c.bf16 %v32_v24, %v31_v23  ;;  %v188_v27 = vld [vmem:[%s469_s2] ss:$0 sm:$0xff]  ;;  %s177_s23 = sshll.u32 %s335_s1, 4  ;;  %s178_s23 = int_to_ptr.vmem [resolvable:$true] %s177_s23 }
   0xc   :  { %s311_s24 = scalar_lea.vmem %s178_s23, 256  ;;  %p316_p1 = scmp.lt.s32.totalorder %s178_s23, %s178_s23 }
   0xd   :  { %271 = vmatpush3.bf16.xpose.msk.msra.mxu0 %vm369_vm1, %v266_v6  ;;  %p312_p0 = scmp.ne.s32.totalorder %s178_s23, %s311_s24  ;;  %p317_p2 = scmp.lt.s32.totalorder %s311_s24, %s311_s24 }
   0xe   :  { %274 = vmatprep.subr.msk.bf16.mxu0 %vm369_vm1, %v272_v10 }
   0xf   :  { %p318_p3 = por %p317_p2, %p316_p1 }
  0x11   :  { %p319_p4 = pnand %p318_p3, %p312_p0 }
  0x15   :  { %277 = vmatpush3.bf16.xpose.msk.msra.mxu0 %vm369_vm1, %v272_v10 }
  0x16   :  { %280 = vmatprep.subr.msk.bf16.mxu0 %vm369_vm1, %v278_v13 }
  0x1d   :  { %283 = vmatpush3.bf16.xpose.msk.msra.mxu0 %vm369_vm1, %v278_v13 }
  0x1e   :  { %286 = vmatprep.subr.msk.bf16.mxu0 %vm369_vm1, %v284_v16 }
  0x25   :  { %289 = vmatpush3.bf16.xpose.msk.msra.mxu0 %vm369_vm1, %v284_v16 }
  0x26   :  { %292 = vmatprep.subr.msk.bf16.mxu0 %vm369_vm1, %v290_v19 }
  0x2d   :  { %295 = vmatpush3.bf16.xpose.msk.msra.mxu0 %vm369_vm1, %v290_v19 }
  0x2e   :  { %298 = vmatprep.subr.msk.bf16.mxu0 %vm369_vm1, %v296_v22 }
  0x35   :  { %301 = vmatpush3.bf16.xpose.msk.msra.mxu0 %vm369_vm1, %v296_v22 }
  0x36   :  { %304 = vmatprep.subr.msk.bf16.mxu0 %vm369_vm1, %v302_v25 }
  0x3d   :  { %307 = vmatpush3.bf16.xpose.msk.msra.mxu0 %vm369_vm1, %v302_v25 }
  0x44   :  { %258 = vmatmul.mubr.msk.f32.vlgmr.msra.gmra.mrb[0].mxu0 %vm40_vm0, %v16_v26 }
 0x117   :  { %v259_v28 = vpop.f32.mrb[0].mxu0 }
 0x118   :  { %v167_v29 = vadd.f32 %v259_v28, %v188_v27  ;;  %v161_v30 = vpop.f32.mrb[1].mxu0 }
 0x119   :  { %v162_v31 = vadd.f32 %v188_v27, %v161_v30 }
 0x11a   :  { %171 = vst [vmem:[#allocation2 + $0x8] sm:$0xff] %v167_v29 }
 0x11b   :  { %170 = vst [vmem:[#allocation2] sm:$0xff] %v162_v31 }
 0x11c   :  { %322 = shalt.err (!%p319_p4)
}
 0x11d   :  { %s323_s2 = scalar_lea.hbm %s470_s3, 256 }
 0x11e   :  { %p324_p5 = scmp.ne.s32.totalorder %s470_s3, %s323_s2  ;;  %p327_p6 = scmp.lt.u32.totalorder %s323_s2, %s470_s3 }
 0x120   :  { %p329_p7 = pnand %p327_p6, %p324_p5 }
 0x122   :  { %332 = shalt.err (!%p329_p7)
}
 0x123   :  { %s336_s30 = smov 128   ;;  %s337_s4 = smov 8  }
 0x124   :  { %183 = dma.vmem_to_hbm [thread:$0]  %s178_s23, 256, %s470_s3, [#allocation3], %s336_s30, %s336_s30, %s337_s4  }
 0x125   :  { %333 = dma.done.wait [#allocation3], 256  }
 0x126   :  { %334 = vsyncadd [#allocation3], 4294967040 }
 0x127   :  { %187 = vsyncpa [#allocation3], 1 }

</bundles_post_ra>
